<compile_context>
chip_gen: v7x
topology: tpu7x:2x2x1
jax: 0.10.0
libtpu: 0.0.40
codegen_flags: <defaults>
</compile_context>

<pallas_src>
import jax
import jax.numpy as jnp
from jax.experimental import pallas as pl
from jax.experimental.pallas import tpu as pltpu


def skconv_kernel(x_ref, y_ref, wfc_t_ref, bn_scale_ref, bn_shift_ref,
                  wdiff_t_ref, bdiff_ref, o_ref):
    x = x_ref[...]                                        # (Bt, C, HW) native dtype
    y = y_ref[...]

    # feats_U = x + y ; feats_S = global average pool (f32 accumulation).
    s = jnp.mean(x + y, axis=-1, dtype=jnp.float32)       # (Bt, C)

    # feats_Z = ReLU(BN(1x1 conv, no bias)) : C -> d  (BN folded to scale/shift)
    z = jnp.dot(s, wfc_t_ref[...],
                preferred_element_type=jnp.float32)       # (Bt, d)
    z = jnp.maximum(z * bn_scale_ref[...] + bn_shift_ref[...], 0.0)

    # 2-way softmax over branches == sigmoid of the logit difference l0 - l1.
    dl = jnp.dot(z, wdiff_t_ref[...],
                 preferred_element_type=jnp.float32) + bdiff_ref[...]  # (Bt, C)
    a0 = 1.0 / (1.0 + jnp.exp(-dl))                       # attention on branch x

    a0 = a0.astype(x.dtype)[:, :, None]                   # (Bt, C, 1)
    # feats_V = a0 * x + (1 - a0) * y == y + a0 * (x - y)
    o_ref[...] = (y + a0 * (x - y)).astype(o_ref.dtype)


def _choose_block_batch(B, C, HW, itemsize, vmem_budget_bytes=40 * 1024 * 1024):
    """Largest per-step batch Bt that divides B, fits VMEM, keeps grid >= 2."""
    # Per image per step: x/y/out blocks double-buffered + ~2 f32 temporaries.
    bytes_per_image = C * HW * (3 * 2 * itemsize + 2 * 4)
    cap = max(1, vmem_budget_bytes // max(bytes_per_image, 1))
    divisors = [t for t in range(1, B + 1) if B % t == 0 and t <= cap]
    if not divisors:
        return 1
    # Prefer keeping >= 2 grid steps so v7x's two TensorCores both get work.
    multi = [t for t in divisors if B // t >= 2]
    return max(multi) if multi else max(divisors)


def skconv_forward(x, y, params, *, M=2, eps=1e-5):
    assert M == 2, "fused sigmoid path is specialized to the module's 2-branch forward"
    B, C, H, W = x.shape
    d = params["w_fc"].shape[0]
    HW = H * W

    x2 = x.reshape(B, C, HW)
    y2 = y.reshape(B, C, HW)

    # Fold BatchNorm (inference) into scale/shift, laid out for (Bt, d) broadcast.
    bn_scale = params["bn_gamma"] / jnp.sqrt(params["bn_var"] + eps)     # (d,)
    bn_shift = params["bn_beta"] - params["bn_mean"] * bn_scale          # (d,)
    bn_scale = bn_scale.reshape(1, d)
    bn_shift = bn_shift.reshape(1, d)

    # fc weight transposed for (Bt, C) @ (C, d); branch-difference weights for
    # the sigmoid form of the 2-way softmax.
    wfc_t = params["w_fc"].T                                             # (C, d)
    wdiff_t = (params["w_fcs"][0] - params["w_fcs"][1]).T                # (d, C)
    bdiff = (params["b_fcs"][0] - params["b_fcs"][1]).reshape(1, C)      # (1, C)

    Bt = _choose_block_batch(B, C, HW, jnp.dtype(x.dtype).itemsize)
    grid = (B // Bt,)

    out = pl.pallas_call(
        skconv_kernel,
        out_shape=jax.ShapeDtypeStruct((B, C, HW), x.dtype),
        grid_spec=pltpu.PrefetchScalarGridSpec(
            num_scalar_prefetch=0,
            grid=grid,
            in_specs=[
                pl.BlockSpec((Bt, C, HW), lambda b: (b, 0, 0)),   # x
                pl.BlockSpec((Bt, C, HW), lambda b: (b, 0, 0)),   # y
                pl.BlockSpec((C, d), lambda b: (0, 0)),           # w_fc^T
                pl.BlockSpec((1, d), lambda b: (0, 0)),           # folded BN scale
                pl.BlockSpec((1, d), lambda b: (0, 0)),           # folded BN shift
                pl.BlockSpec((d, C), lambda b: (0, 0)),           # (w_fcs0 - w_fcs1)^T
                pl.BlockSpec((1, C), lambda b: (0, 0)),           # b_fcs0 - b_fcs1
            ],
            out_specs=pl.BlockSpec((Bt, C, HW), lambda b: (b, 0, 0)),
        ),
        compiler_params=pltpu.CompilerParams(
            dimension_semantics=("parallel",),
            vmem_limit_bytes=64 * 1024 * 1024),
    )(x2, y2, wfc_t, bn_scale, bn_shift, wdiff_t, bdiff)

    return out.reshape(B, C, H, W)


def skconv_ref(x, y, params, *, M=2, eps=1e-5):
    """Pure-JAX reference of the PyTorch forward (inference-mode BN)."""
    feats = jnp.stack([x, y], axis=1)                          # (B, M, C, H, W)
    U = feats.sum(axis=1)                                      # (B, C, H, W)
    S = U.mean(axis=(2, 3))                                    # (B, C)
    Z = S @ params["w_fc"].T                                   # (B, d)
    scale = params["bn_gamma"] / jnp.sqrt(params["bn_var"] + eps)
    Z = Z * scale + (params["bn_beta"] - params["bn_mean"] * scale)
    Z = jnp.maximum(Z, 0.0)
    att = jnp.einsum("bd,mcd->bmc", Z, params["w_fcs"]) + params["b_fcs"][None]
    att = jax.nn.softmax(att, axis=1)                          # (B, M, C)
    V = (feats * att[:, :, :, None, None]).sum(axis=1)
    return V


def make_params(key, features, d, M):
    ks = jax.random.split(key, 6)
    params = {
        # fc: Conv2d(features -> d, 1x1, bias=False) weight, squeezed to (d, C)
        "w_fc": 0.1 * jax.random.normal(ks[0], (d, features), jnp.float32),
        # BatchNorm2d(d) parameters / running stats (deterministic)
        "bn_gamma": 1.0 + 0.05 * jax.random.normal(ks[1], (d,), jnp.float32),
        "bn_beta": 0.05 * jax.random.normal(ks[2], (d,), jnp.float32),
        "bn_mean": 0.01 * jax.random.normal(ks[3], (d,), jnp.float32),
        "bn_var": jnp.abs(1.0 + 0.05 * jax.random.normal(ks[4], (d,), jnp.float32)),
        # fcs[m]: Conv2d(d -> features, 1x1, bias=True), squeezed to (M, C, d)
        "w_fcs": 0.1 * jax.random.normal(ks[5], (M, features, d), jnp.float32),
        "b_fcs": 0.01 * jnp.arange(M * features, dtype=jnp.float32).reshape(M, features),
    }
    return params


if __name__ == "__main__":
    # Module config: features divisible by G=32 (for the unused grouped convs in
    # __init__); d = max(features / r, L) = 32.
    features, M, r, L = 32, 2, 16, 32
    d = int(max(features / r, L))
    B, H, W = 2, 16, 16

    key = jax.random.PRNGKey(0)
    kx, ky, kp = jax.random.split(key, 3)
    x = jax.random.normal(kx, (B, features, H, W), jnp.float32)
    y = jax.random.normal(ky, (B, features, H, W), jnp.float32)
    params = make_params(kp, features, d, M)

    out = skconv_forward(x, y, params, M=M)
    out = jax.block_until_ready(out)

    ref = skconv_ref(x, y, params, M=M)
    assert out.shape == (B, features, H, W)
    assert jnp.allclose(out, ref, atol=1e-5, rtol=1e-5), float(jnp.max(jnp.abs(out - ref)))

    print("KERNEL_OK")
</pallas_src>

<mosaic_0001>
module attributes {stable_mosaic.version = 11 : i64} {
  func.func @skconv_kernel(%arg0: i32, %arg1: memref<1x32x256xf32, #tpu.memory_space<vmem>>, %arg2: memref<1x32x256xf32, #tpu.memory_space<vmem>>, %arg3: memref<32x32xf32, #tpu.memory_space<vmem>>, %arg4: memref<1x32xf32, #tpu.memory_space<vmem>>, %arg5: memref<1x32xf32, #tpu.memory_space<vmem>>, %arg6: memref<32x32xf32, #tpu.memory_space<vmem>>, %arg7: memref<1x32xf32, #tpu.memory_space<vmem>>, %arg8: memref<1x32x256xf32, #tpu.memory_space<vmem>>) attributes {dimension_semantics = [#tpu.dimension_semantics<parallel>], iteration_bounds = array<i64: 2>, scalar_prefetch = 0 : i64, scratch_operands = 0 : i64, tpu.core_type = #tpu.core_type<tc>, window_params = [{transform_indices = @transform_0, window_bounds = array<i64: 1, 32, 256>}, {transform_indices = @transform_1, window_bounds = array<i64: 1, 32, 256>}, {pipeline_mode = #tpu.pipeline_mode<synchronous>, transform_indices = @transform_2, window_bounds = array<i64: 32, 32>}, {pipeline_mode = #tpu.pipeline_mode<synchronous>, transform_indices = @transform_3, window_bounds = array<i64: 1, 32>}, {pipeline_mode = #tpu.pipeline_mode<synchronous>, transform_indices = @transform_4, window_bounds = array<i64: 1, 32>}, {pipeline_mode = #tpu.pipeline_mode<synchronous>, transform_indices = @transform_5, window_bounds = array<i64: 32, 32>}, {pipeline_mode = #tpu.pipeline_mode<synchronous>, transform_indices = @transform_6, window_bounds = array<i64: 1, 32>}, {transform_indices = @transform_7, window_bounds = array<i64: 1, 32, 256>}]} {
    %c0 = arith.constant 0 : index
    %c0_0 = arith.constant 0 : index
    %c0_1 = arith.constant 0 : index
    %0 = vector.load %arg1[%c0, %c0_0, %c0_1] : memref<1x32x256xf32, #tpu.memory_space<vmem>>, vector<1x32x256xf32>
    %c0_2 = arith.constant 0 : index
    %c0_3 = arith.constant 0 : index
    %c0_4 = arith.constant 0 : index
    %1 = vector.load %arg2[%c0_2, %c0_3, %c0_4] : memref<1x32x256xf32, #tpu.memory_space<vmem>>, vector<1x32x256xf32>
    %2 = arith.addf %0, %1 : vector<1x32x256xf32>
    %cst = arith.constant dense<0.000000e+00> : vector<1x32xf32>
    %3 = vector.multi_reduction <add>, %2, %cst [2] : vector<1x32x256xf32> to vector<1x32xf32>
    %cst_5 = arith.constant 2.560000e+02 : f32
    %4 = vector.broadcast %cst_5 : f32 to vector<1x32xf32>
    %5 = arith.divf %3, %4 : vector<1x32xf32>
    %c0_6 = arith.constant 0 : index
    %c0_7 = arith.constant 0 : index
    %6 = vector.load %arg3[%c0_6, %c0_7] : memref<32x32xf32, #tpu.memory_space<vmem>>, vector<32x32xf32>
    %cst_8 = arith.constant dense<0.000000e+00> : vector<1x32xf32>
    %7 = tpu.matmul %5, %6, %cst_8 {dimension_numbers = #tpu.dot_dimension_numbers<[1], [0], [0], [1], [0, 0, 1, 1], [], []>} : vector<1x32xf32>, vector<32x32xf32>, vector<1x32xf32> -> vector<1x32xf32>
    %c0_9 = arith.constant 0 : index
    %c0_10 = arith.constant 0 : index
    %8 = vector.load %arg4[%c0_9, %c0_10] : memref<1x32xf32, #tpu.memory_space<vmem>>, vector<1x32xf32>
    %9 = arith.mulf %7, %8 : vector<1x32xf32>
    %c0_11 = arith.constant 0 : index
    %c0_12 = arith.constant 0 : index
    %10 = vector.load %arg5[%c0_11, %c0_12] : memref<1x32xf32, #tpu.memory_space<vmem>>, vector<1x32xf32>
    %11 = arith.addf %9, %10 : vector<1x32xf32>
    %cst_13 = arith.constant 0.000000e+00 : f32
    %12 = vector.broadcast %cst_13 : f32 to vector<1x32xf32>
    %13 = arith.maximumf %11, %12 : vector<1x32xf32>
    %c0_14 = arith.constant 0 : index
    %c0_15 = arith.constant 0 : index
    %14 = vector.load %arg6[%c0_14, %c0_15] : memref<32x32xf32, #tpu.memory_space<vmem>>, vector<32x32xf32>
    %cst_16 = arith.constant dense<0.000000e+00> : vector<1x32xf32>
    %15 = tpu.matmul %13, %14, %cst_16 {dimension_numbers = #tpu.dot_dimension_numbers<[1], [0], [0], [1], [0, 0, 1, 1], [], []>} : vector<1x32xf32>, vector<32x32xf32>, vector<1x32xf32> -> vector<1x32xf32>
    %c0_17 = arith.constant 0 : index
    %c0_18 = arith.constant 0 : index
    %16 = vector.load %arg7[%c0_17, %c0_18] : memref<1x32xf32, #tpu.memory_space<vmem>>, vector<1x32xf32>
    %17 = arith.addf %15, %16 : vector<1x32xf32>
    %cst_19 = arith.constant 0.000000e+00 : f32
    %18 = vector.broadcast %cst_19 : f32 to vector<1x32xf32>
    %19 = arith.subf %18, %17 : vector<1x32xf32>
    %20 = math.exp %19 : vector<1x32xf32>
    %cst_20 = arith.constant 1.000000e+00 : f32
    %21 = vector.broadcast %cst_20 : f32 to vector<1x32xf32>
    %22 = arith.addf %21, %20 : vector<1x32xf32>
    %cst_21 = arith.constant 1.000000e+00 : f32
    %23 = vector.broadcast %cst_21 : f32 to vector<1x32xf32>
    %24 = arith.divf %23, %22 : vector<1x32xf32>
    %25 = vector.shape_cast %24 : vector<1x32xf32> to vector<1x32x1xf32>
    %26 = arith.subf %0, %1 : vector<1x32x256xf32>
    %27 = vector.broadcast %25 : vector<1x32x1xf32> to vector<1x32x256xf32>
    %28 = arith.mulf %27, %26 : vector<1x32x256xf32>
    %29 = arith.addf %1, %28 : vector<1x32x256xf32>
    %c0_22 = arith.constant 0 : index
    %c0_23 = arith.constant 0 : index
    %c0_24 = arith.constant 0 : index
    %30 = vector.load %arg8[%c0_22, %c0_23, %c0_24] : memref<1x32x256xf32, #tpu.memory_space<vmem>>, vector<1x32x256xf32>
    tpu.vector_store %arg8[%c0_22, %c0_23, %c0_24], %29 {strides = array<i32>} : memref<1x32x256xf32, #tpu.memory_space<vmem>>, vector<1x32x256xf32>,
    return
  }
  func.func @transform_0(%arg0: i32) -> (i32, i32, i32) {
    %c0_i32 = arith.constant 0 : i32
    %c0_i32_0 = arith.constant 0 : i32
    %c0_i32_1 = arith.constant 0 : i32
    return %arg0, %c0_i32, %c0_i32_0 : i32, i32, i32
  }
  func.func @transform_1(%arg0: i32) -> (i32, i32, i32) {
    %c0_i32 = arith.constant 0 : i32
    %c0_i32_0 = arith.constant 0 : i32
    %c0_i32_1 = arith.constant 0 : i32
    return %arg0, %c0_i32, %c0_i32_0 : i32, i32, i32
  }
  func.func @transform_2(%arg0: i32) -> (i32, i32) {
    %c0_i32 = arith.constant 0 : i32
    %c0_i32_0 = arith.constant 0 : i32
    %c0_i32_1 = arith.constant 0 : i32
    return %c0_i32, %c0_i32_0 : i32, i32
  }
  func.func @transform_3(%arg0: i32) -> (i32, i32) {
    %c0_i32 = arith.constant 0 : i32
    %c0_i32_0 = arith.constant 0 : i32
    %c0_i32_1 = arith.constant 0 : i32
    return %c0_i32, %c0_i32_0 : i32, i32
  }
  func.func @transform_4(%arg0: i32) -> (i32, i32) {
    %c0_i32 = arith.constant 0 : i32
    %c0_i32_0 = arith.constant 0 : i32
    %c0_i32_1 = arith.constant 0 : i32
    return %c0_i32, %c0_i32_0 : i32, i32
  }
  func.func @transform_5(%arg0: i32) -> (i32, i32) {
    %c0_i32 = arith.constant 0 : i32
    %c0_i32_0 = arith.constant 0 : i32
    %c0_i32_1 = arith.constant 0 : i32
    return %c0_i32, %c0_i32_0 : i32, i32
  }
  func.func @transform_6(%arg0: i32) -> (i32, i32) {
    %c0_i32 = arith.constant 0 : i32
    %c0_i32_0 = arith.constant 0 : i32
    %c0_i32_1 = arith.constant 0 : i32
    return %c0_i32, %c0_i32_0 : i32, i32
  }
  func.func @transform_7(%arg0: i32) -> (i32, i32, i32) {
    %c0_i32 = arith.constant 0 : i32
    %c0_i32_0 = arith.constant 0 : i32
    %c0_i32_1 = arith.constant 0 : i32
    return %arg0, %c0_i32, %c0_i32_0 : i32, i32, i32
  }
}

</mosaic_0001>

<bundles_post_ra>
// kernel: tpu_custom_call.1
= control target key start
LH: loop header
LB: loop body
LE: loop exit
PB: predicated region body
PF: predicated region fallthrough
CT: control target
= control target key end

     0   :  { %s1842_s0 = inlined_call_operand.hbm [shape: f32[2,32,256], index: 0, kind: input, shape index: {}]   ;;  %s1843_s1 = inlined_call_operand.hbm [shape: f32[2,32,256], index: 1, kind: input, shape index: {}]   ;;  %s1844_s2 = inlined_call_operand.hbm [shape: f32[32,32], index: 2, kind: input, shape index: {}]   ;;  %s1845_s3 = inlined_call_operand.hbm [shape: f32[1,32], index: 3, kind: input, shape index: {}]   ;;  %s1846_s4 = inlined_call_operand.hbm [shape: f32[1,32], index: 4, kind: input, shape index: {}]   ;;  %s1847_s5 = inlined_call_operand.hbm [shape: f32[32,32], index: 5, kind: input, shape index: {}]   ;;  %s1848_s6 = inlined_call_operand.hbm [shape: f32[1,32], index: 6, kind: input, shape index: {}]   ;;  %s1849_s7 = inlined_call_operand.hbm [shape: f32[2,32,256], index: 7, kind: output, shape index: {}]  }
   0x1   :  { %1854 = sst [smem:[#allocation21_spill]] %s1842_s0 }
   0x2   :  { %1855 = sst [smem:[#allocation22_spill]] %s1844_s2 }
   0x3   :  { %1856 = sst [smem:[#allocation23_spill]] %s1845_s3 }
   0x4   :  { %1857 = sst [smem:[#allocation24_spill]] %s1846_s4 }
   0x5   :  { %12 = vsyncpa [#allocation3], 0 }
   0x6   :  { %14 = vsyncpa [#allocation3 + $0x1], 0 }
   0x7   :  { %15 = vsyncpa [#allocation6], 0 }
   0x8   :  { %17 = vsyncpa [#allocation6 + $0x1], 0 }
   0x9   :  { %18 = vsyncpa [#allocation9], 0 }
   0xa   :  { %19 = vsyncpa [#allocation12], 0 }
   0xb   :  { %20 = vsyncpa [#allocation4], 0 }
   0xc   :  { %22 = vsyncpa [#allocation4 + $0x1], 0  ;;  %s1382_s24 = smov 0   ;;  %s1384_s25 = smov 0  }
   0xd   :  { %s1386_s26 = smov 0   ;;  %s1388_s27 = smov 0  }
   0xe LB: > { %s1325_s28 = smov [#allocation7]   ;;  %s1403_s30 = sadd.s32 4294967295, %s1323_s27   ;;  %s1323_s27 = sphi %s1388_s27, %s1884_s27   ;;  %s1319_s26 = sphi %s1386_s26, %s1883_s26   ;;  %s1315_s25 = sphi %s1384_s25, %s1882_s25   ;;  %s1311_s24 = sphi %s1382_s24, %s1881_s24  }
   0xf   : > { %s228_s29 = sshll.u32 %s1325_s28, 4  ;;  %p850_p0 = scmp.ge.s32.totalorder %s1323_s27, 1  ;;  %s1408_s29 = int_to_ptr.vmem [resolvable:$true] %s228_s29 }
  0x10   : > { %p1850_p1 = scmp.eq.s32.totalorder %s1403_s30, 0  ;;  %p216_p2 = scmp.lt.s32.totalorder %s1323_s27, 3 }
  0x11   : > { %s1326_s9 = smov [#allocation8]   ;;  %s1327_s12 = smov [#allocation11]  }
  0x12   : > { %p1410_p3 = pnand %p850_p0, %p216_p2  ;;  %s242_s10 = sshll.u32 %s1326_s9, 4  ;;  %s1423_s10 = int_to_ptr.vmem [resolvable:$true] %s242_s10 }
  0x13   : > { %s263_s13 = sshll.u32 %s1327_s12, 4  ;;  %s1860_s2 = sld [smem:[#allocation22_spill]]  ;;  %s1425_s13 = int_to_ptr.vmem [resolvable:$true] %s263_s13 }
  0x14   : > { %s1858_s8 = scalar_select %p1410_p3, 1, 0 }
  0x15   : > { %p952_p5 = pneg %p1410_p3 }
  0x17   : > { %p1419_p6 = pnand %p952_p5, %p1850_p1 }
  0x19   : > { %s1041_s16 = scalar_lea.hbm %s1860_s2, 512  ;;  %p1435_p8 = pneg %p1419_p6 }
  0x1a   : > { %p1042_p7 = scmp.ne.s32.totalorder %s1860_s2, %s1041_s16  ;;  %p1048_p11 = scmp.lt.u32.totalorder %s1041_s16, %s1860_s2 }
  0x1c   : > { %p1044_p9 = pnand %p1435_p8, %p1042_p7 }
  0x1e   : > { %p1045_p10 = pneg %p1044_p9 }
  0x20   : > { %p1050_p12 = pnand %p1048_p11, %p1045_p10 }
  0x22   : > { %1053 = shalt.err (!%p1050_p12)
}
  0x23   : > { %s1054_s22 = scalar_lea.vmem %s1408_s29, 512  ;;  %p1062_p5 = scmp.lt.s32.totalorder %s1408_s29, %s1408_s29 }
  0x24   : > { %p1055_p13 = scmp.ne.s32.totalorder %s1408_s29, %s1054_s22  ;;  %p1063_p4 = scmp.lt.s32.totalorder %s1054_s22, %s1054_s22 }
  0x26   : > { %p1057_p0 = pnand %p1055_p13, %p1435_p8  ;;  %p1064_p7 = por %p1063_p4, %p1062_p5 }
  0x28   : > { %p1058_p2 = pneg %p1057_p0 }
  0x2a   : > { %p1065_p9 = pnand %p1064_p7, %p1058_p2 }
  0x2c   : > { %1068 = shalt.err (!%p1065_p9)
}
  0x2d   : > { %s1328_s23 = smov 128   ;;  %s1329_s28 = smov 8  }
  0x2e   : > { %955 = dma.hbm_to_vmem [thread:$0]  (!%p1419_p6), %s1860_s2, 512, %s1408_s29, [#allocation6], %s1328_s23, %s1328_s23, %s1329_s28  }
  0x2f   : > { %s1862_s3 = sld [smem:[#allocation23_spill]] }
  0x35   : > { %s1069_s16 = scalar_lea.hbm %s1862_s3, 16 }
  0x36   : > { %p1070_p4 = scmp.ne.s32.totalorder %s1862_s3, %s1069_s16  ;;  %p1076_p12 = scmp.lt.u32.totalorder %s1069_s16, %s1862_s3 }
  0x38   : > { %p1072_p10 = pnand %p1070_p4, %p1435_p8 }
  0x3a   : > { %p1073_p11 = pneg %p1072_p10 }
  0x3c   : > { %p1078_p13 = pnand %p1076_p12, %p1073_p11 }
  0x3e   : > { %1081 = shalt.err (!%p1078_p13)
}
  0x3f   : > { %s1082_s29 = scalar_lea.vmem %s1423_s10, 16  ;;  %s1089_s22 = scalar_lea.vmem %s1423_s10, 32 }
  0x40   : > { %p1083_p0 = scmp.ne.s32.totalorder %s1423_s10, %s1082_s29  ;;  %p1090_p7 = scmp.lt.s32.totalorder %s1423_s10, %s1423_s10 }
  0x41   : > { %p1091_p9 = scmp.lt.s32.totalorder %s1089_s22, %s1082_s29 }
  0x42   : > { %p1085_p2 = pnand %p1083_p0, %p1435_p8 }
  0x43   : > { %p1092_p4 = por %p1091_p9, %p1090_p7 }
  0x44   : > { %p1086_p5 = pneg %p1085_p2 }
  0x46   : > { %p1093_p10 = pnand %p1092_p4, %p1086_p5 }
  0x48   : > { %1096 = shalt.err (!%p1093_p10)
}
  0x49   : > { %958 = dma.hbm_to_vmem [thread:$0]  (!%p1419_p6), %s1862_s3, 16, %s1423_s10, [#allocation9]  }
  0x4a   : > { %s1097_s16 = scalar_lea.hbm %s1847_s5, 512 }
  0x4b   : > { %p1098_p11 = scmp.ne.s32.totalorder %s1847_s5, %s1097_s16  ;;  %p1104_p0 = scmp.lt.u32.totalorder %s1097_s16, %s1847_s5 }
  0x4d   : > { %p1100_p12 = pnand %p1098_p11, %p1435_p8 }
  0x4f   : > { %p1101_p13 = pneg %p1100_p12 }
  0x51   : > { %p1106_p2 = pnand %p1104_p0, %p1101_p13 }
  0x53   : > { %1109 = shalt.err (!%p1106_p2)
}
  0x54   : > { %s1110_s10 = scalar_lea.vmem %s1425_s13, 512  ;;  %p1118_p4 = scmp.lt.s32.totalorder %s1425_s13, %s1425_s13 }
  0x55   : > { %p1111_p5 = scmp.ne.s32.totalorder %s1425_s13, %s1110_s10  ;;  %p1119_p10 = scmp.lt.s32.totalorder %s1110_s10, %s1110_s10 }
  0x57   : > { %p1113_p7 = pnand %p1111_p5, %p1435_p8  ;;  %p1120_p11 = por %p1119_p10, %p1118_p4 }
  0x59   : > { %p1114_p9 = pneg %p1113_p7 }
  0x5b   : > { %p1121_p12 = pnand %p1120_p11, %p1114_p9 }
  0x5d   : > { %1124 = shalt.err (!%p1121_p12)
}
  0x5e   : > { %964 = dma.hbm_to_vmem [thread:$0]  (!%p1419_p6), %s1847_s5, 512, %s1425_s13, [#allocation12], %s1328_s23, %s1328_s23, %s1329_s28  }
  0x5f   : > { %s1330_s9 = smov [#allocation10]   ;;  %s1331_s14 = smov [#allocation13]  }
  0x60   : > { %s253_s12 = sshll.u32 %s1330_s9, 4  ;;  %s277_s15 = sshll.u32 %s1331_s14, 4  ;;  %s254_s12 = int_to_ptr.vmem [resolvable:$true] %s253_s12  ;;  %s278_s15 = int_to_ptr.vmem [resolvable:$true] %s277_s15 }
  0x61   : > { %s1863_s4 = sld [smem:[#allocation24_spill]] }
  0x67   : > { %s1125_s18 = scalar_lea.hbm %s1863_s4, 16 }
  0x68   : > { %p1126_p13 = scmp.ne.s32.totalorder %s1863_s4, %s1125_s18  ;;  %p1132_p5 = scmp.lt.u32.totalorder %s1125_s18, %s1863_s4 }
  0x6a   : > { %p1128_p0 = pnand %p1126_p13, %p1435_p8 }
  0x6c   : > { %p1129_p2 = pneg %p1128_p0 }
  0x6e   : > { %p1134_p7 = pnand %p1132_p5, %p1129_p2 }
  0x70   : > { %1137 = shalt.err (!%p1134_p7)
}
  0x71   : > { %s1138_s13 = scalar_lea.vmem %s254_s12, 16  ;;  %s1145_s23 = scalar_lea.vmem %s254_s12, 32 }
  0x72   : > { %p1139_p9 = scmp.ne.s32.totalorder %s254_s12, %s1138_s13  ;;  %p1146_p11 = scmp.lt.s32.totalorder %s254_s12, %s254_s12 }
  0x73   : > { %p1147_p12 = scmp.lt.s32.totalorder %s1145_s23, %s1138_s13 }
  0x74   : > { %p1141_p4 = pnand %p1139_p9, %p1435_p8 }
  0x75   : > { %p1148_p1 = por %p1147_p12, %p1146_p11 }
  0x76   : > { %p1142_p10 = pneg %p1141_p4 }
  0x78   : > { %p1149_p3 = pnand %p1148_p1, %p1142_p10 }
  0x7a   : > { %1152 = shalt.err (!%p1149_p3)
}
  0x7b   : > { %961 = dma.hbm_to_vmem [thread:$0]  (!%p1419_p6), %s1863_s4, 16, %s254_s12, [#allocation9]  }
  0x7c   : > { %s1153_s16 = scalar_lea.hbm %s1848_s6, 16 }
  0x7d   : > { %p1154_p13 = scmp.ne.s32.totalorder %s1848_s6, %s1153_s16  ;;  %p1160_p3 = scmp.lt.u32.totalorder %s1153_s16, %s1848_s6 }
  0x7f   : > { %p1156_p0 = pnand %p1154_p13, %p1435_p8 }
  0x81   : > { %p1157_p1 = pneg %p1156_p0 }
  0x83   : > { %p1162_p2 = pnand %p1160_p3, %p1157_p1 }
  0x85   : > { %1165 = shalt.err (!%p1162_p2)
}
  0x86   : > { %s1166_s10 = scalar_lea.vmem %s278_s15, 16  ;;  %s1173_s12 = scalar_lea.vmem %s278_s15, 32 }
  0x87   : > { %p1167_p5 = scmp.ne.s32.totalorder %s278_s15, %s1166_s10  ;;  %p1174_p4 = scmp.lt.s32.totalorder %s278_s15, %s278_s15 }
  0x88   : > { %p1175_p10 = scmp.lt.s32.totalorder %s1173_s12, %s1166_s10 }
  0x89   : > { %p1169_p7 = pnand %p1167_p5, %p1435_p8 }
  0x8a   : > { %p1176_p11 = por %p1175_p10, %p1174_p4 }
  0x8b   : > { %p1170_p9 = pneg %p1169_p7 }
  0x8d   : > { %p1177_p12 = pnand %p1176_p11, %p1170_p9 }
  0x8f   : > { %1180 = shalt.err (!%p1177_p12)
}
  0x90   : > { %967 = dma.hbm_to_vmem [thread:$0]  (!%p1419_p6), %s1848_s6, 16, %s278_s15, [#allocation12]  }
  0x91   : > { %s849_s19 = sadd.s32 4294967294, %s1323_s27   ;;  %s1547_s11 = sadd.s32 1, %s1323_s27  }
  0x92   : > { %s35_s23 = sadd.s32 1, %s1319_s26  ;;  %s32_s28 = ssub.s32 %s1323_s27, %s1547_s11 }
  0x93   : > { %p42_p8 = scmp.ne.s32.totalorder %s1319_s26, %s1315_s25  ;;  %p33_p13 = scmp.eq.s32.totalorder %s32_s28, 0 }
  0x94   : > { %p43_p0 = scmp.eq.s32.totalorder %s1323_s27, 0  ;;  %p48_p1 = scmp.ne.s32.totalorder %s1315_s25, %s1311_s24 }
  0x95   : > { %p203_p3 = scmp.eq.s32.totalorder %s1403_s30, 1  ;;  %p1864_p5 = scmp.eq.s32.totalorder %s1403_s30, 0 }
  0x96   : > { %s1559_s22 = scalar_select %p33_p13, %s1319_s26, %s35_s23  }
  0x97   : > { %p44_p2 = por %p43_p0, %p42_p8  ;;  %p1563_p7 = por %p1864_p5, %p48_p1 }
  0x98   : > { %p1567_p6 = por %p203_p3, %p42_p8  ;;  %p209_p9 = scmp.eq.s32.totalorder %s849_s19, 1 }
  0x99   : > { %p984_p4 = scmp.lt.s32.totalorder %s1323_s27, 2  ;;  %s288_s14 = sand.u32 1, %s1319_s26  }
  0x9a   : > { %s1866_s9 = scalar_select %p1567_p6, 1, 0 }
  0x9b   : > { %p1573_p10 = por %p209_p9, %p48_p1  ;;  %s1577_s17 = sshll.u32 %s288_s14, 6 }
  0x9c   : > { %s1852_s18 = sshll.u32 %s1323_s27, 10  ;;  %s1868_s0 = sld [smem:[#allocation21_spill]] }
  0x9d   : > { %s1867_s16 = scalar_select %p1573_p10, 1, 0 }
  0x9e   : > { %s292_s12 = scalar_lea.vmem [#allocation2], %s1577_s17  ;;  %p1588_p11 = pnand %p984_p4, %p44_p2 }
  0x9f   : > { %s299_s29 = sshll.u32 %s292_s12, 4  ;;  %s1594_s19 = scalar_lea.sflag [#allocation3], %s288_s14  ;;  %s1592_s29 = int_to_ptr.vmem [resolvable:$true] %s299_s29 }
  0xa0   : > { %p1183_p8 = pneg %p1588_p11 }
  0xa2   : > { %s1585_s10 = scalar_lea.hbm %s1868_s0, %s1852_s18  ;;  %s1186_s21 = scalar_lea.hbm %s1868_s0, 2048 }
  0xa3   : > { %s1181_s23 = scalar_lea.hbm %s1585_s10, 1024  ;;  %p1187_p1 = scmp.lt.u32.totalorder %s1585_s10, %s1868_s0 }
  0xa4   : > { %p1182_p12 = scmp.ne.s32.totalorder %s1585_s10, %s1181_s23  ;;  %p1188_p3 = scmp.lt.u32.totalorder %s1186_s21, %s1181_s23 }
  0xa5   : > { %p1190_p5 = scmp.lt.u32.totalorder %s1181_s23, %s1585_s10 }
  0xa6   : > { %p1184_p13 = pnand %p1183_p8, %p1182_p12  ;;  %p1189_p2 = por %p1188_p3, %p1187_p1 }
  0xa8   : > { %p1185_p0 = pneg %p1184_p13  ;;  %p1191_p9 = por %p1190_p5, %p1189_p2 }
  0xaa   : > { %p1192_p4 = pnand %p1191_p9, %p1185_p0 }
  0xac   : > { %1195 = shalt.err (!%p1192_p4)
}
  0xad   : > { %s1196_s14 = scalar_lea.vmem %s1592_s29, 1024  ;;  %s1332_s28 = smov [#allocation2]  }
  0xae   : > { %p1197_p12 = scmp.ne.s32.totalorder %s1592_s29, %s1196_s14  ;;  %s1201_s20 = sshll.u32 %s1332_s28, 4  ;;  %s1202_s20 = int_to_ptr.vmem [resolvable:$false] %s1201_s20 }
  0xaf   : > { %s1203_s18 = scalar_lea.vmem %s1202_s20, 2048  ;;  %p1204_p6 = scmp.lt.s32.totalorder %s1592_s29, %s1202_s20 }
  0xb0   : > { %p1199_p13 = pnand %p1197_p12, %p1183_p8  ;;  %p1205_p1 = scmp.lt.s32.totalorder %s1203_s18, %s1196_s14 }
  0xb2   : > { %p1200_p10 = pneg %p1199_p13  ;;  %p1206_p3 = por %p1205_p1, %p1204_p6 }
  0xb4   : > { %p1207_p2 = pnand %p1206_p3, %p1200_p10 }
  0xb6   : > { %1210 = shalt.err (!%p1207_p2)
}
  0xb7   : > { %s1333_s23 = smov 256   ;;  %s1334_s21 = smov 16  }
  0xb8   : > { %971 = dma.hbm_to_vmem [thread:$0]  (!%p1588_p11), %s1585_s10, 1024, %s1592_s29, %s1594_s19, %s1333_s23, %s1333_s23, %s1334_s21  }
  0xb9   : > { %s1870_s12 = sshll.u32 %s1323_s27, 10  ;;  %s313_s18 = scalar_lea.vmem [#allocation5], %s1577_s17 }
  0xba   : > { %s1630_s20 = scalar_lea.hbm %s1843_s1, %s1870_s12  ;;  %s320_s0 = sshll.u32 %s313_s18, 4  ;;  %s1634_s0 = int_to_ptr.vmem [resolvable:$true] %s320_s0 }
  0xbb   : > { %s309_s2 = sand.u32 1, %s1323_s27   ;;  %s1211_s4 = scalar_lea.hbm %s1630_s20, 1024 }
  0xbc   : > { %s1636_s3 = scalar_lea.sflag [#allocation6], %s309_s2  ;;  %p1212_p6 = scmp.ne.s32.totalorder %s1630_s20, %s1211_s4 }
  0xbd   : > { %s1216_s19 = scalar_lea.hbm %s1843_s1, 2048  ;;  %p1217_p5 = scmp.lt.u32.totalorder %s1630_s20, %s1843_s1 }
  0xbe   : > { %p1214_p10 = pnand %p1212_p6, %p1183_p8  ;;  %p1218_p9 = scmp.lt.u32.totalorder %s1216_s19, %s1211_s4 }
  0xbf   : > { %p1220_p12 = scmp.lt.u32.totalorder %s1211_s4, %s1630_s20 }
  0xc0   : > { %p1215_p0 = pneg %p1214_p10  ;;  %p1219_p4 = por %p1218_p9, %p1217_p5 }
  0xc2   : > { %p1221_p13 = por %p1220_p12, %p1219_p4 }
  0xc4   : > { %p1222_p1 = pnand %p1221_p13, %p1215_p0 }
  0xc6   : > { %1225 = shalt.err (!%p1222_p1)
}
  0xc7   : > { %s1226_s2 = scalar_lea.vmem %s1634_s0, 1024  ;;  %s1335_s17 = smov [#allocation5]  }
  0xc8   : > { %p1227_p3 = scmp.ne.s32.totalorder %s1634_s0, %s1226_s2  ;;  %s1231_s28 = sshll.u32 %s1335_s17, 4  ;;  %s1232_s28 = int_to_ptr.vmem [resolvable:$false] %s1231_s28 }
  0xc9   : > { %s1233_s18 = scalar_lea.vmem %s1232_s28, 2048  ;;  %p1234_p10 = scmp.lt.s32.totalorder %s1634_s0, %s1232_s28 }
  0xca   : > { %p1229_p2 = pnand %p1227_p3, %p1183_p8  ;;  %p1235_p5 = scmp.lt.s32.totalorder %s1233_s18, %s1226_s2 }
  0xcc   : > { %p1230_p6 = pneg %p1229_p2  ;;  %p1236_p9 = por %p1235_p5, %p1234_p10 }
  0xce   : > { %p1237_p4 = pnand %p1236_p9, %p1230_p6 }
  0xd0   : > { %1240 = shalt.err (!%p1237_p4)
}
  0xd1   : > { %974 = dma.hbm_to_vmem [thread:$0]  (!%p1588_p11), %s1630_s20, 1024, %s1634_s0, %s1636_s3, %s1333_s23, %s1333_s23, %s1334_s21  }
  0xd2   : > { %p1871_p8 = scmp.ne.s32.totalorder %s1858_s8, 0 }
  0xd3   : > { %s1668_s4 = sand.u32 (!%p1871_p8), 1, %s1315_s25  }
  0xd4   : > { %332 = sbr.rel (%p1871_p8) target bundleno = 996 (0x3e4), region = 48  ;;  %s1671_s10 = sshll.u32 (!%p1871_p8), %s1668_s4, 6 }
  0xd5   : > { %s335_s13 = scalar_lea.sflag (!%p1871_p8), [#allocation3], %s1668_s4  ;;  %s1675_s29 = scalar_lea.vmem (!%p1871_p8), [#allocation2], %s1671_s10 }
  0xdb   : > { %1286 = dma.done.wait (%p1563_p7), %s335_s13, 1024  }
  0xdc   : > { %1288 = vsyncadd (%p1563_p7), %s335_s13, 4294966272  ;;  %s343_s0 = sand.u32 1, %s1403_s30   ;;  %s1683_s8 = scalar_lea.vmem [#allocation5], %s1671_s10 }
  0xdd   : > { %s344_s3 = scalar_lea.sflag [#allocation6], %s343_s0 }
  0xde   : > { %1290 = dma.done.wait (%p1563_p7), %s344_s3, 1024  }
  0xdf   : > { %1292 = vsyncadd (%p1563_p7), %s344_s3, 4294966272  ;;  %p1872_p11 = scmp.eq.s32.totalorder %s1403_s30, 0 }
  0xe1   : > { %1294 = dma.done.wait (%p1872_p11), [#allocation6], 512   ;;  %p1873_p0 = pmov %p1872_p11 }
  0xe3   : > { %1296 = vsyncadd (%p1873_p0), [#allocation6], 4294966784  ;;  %p1874_p12 = pmov %p1873_p0 }
  0xe4   : > { %p1875_p13 = pmov %p1873_p0 }
  0xe5   : > { %1298 = dma.done.wait (%p1874_p12), [#allocation9], 32  }
  0xe6   : > { %1300 = vsyncadd (%p1875_p13), [#allocation9], 4294967264  ;;  %p1876_p1 = pmov %p1873_p0 }
  0xe7   : > { %p1877_p3 = pmov %p1873_p0 }
  0xe8   : > { %1302 = dma.done.wait (%p1876_p1), [#allocation12], 528  }
  0xe9   : > { %1304 = vsyncadd (%p1877_p3), [#allocation12], 4294966768  ;;  %v1702_v0 = vld [vmem:[%s1675_s29] sm:$0xff]  ;;  %v1705_v1 = vld [vmem:[%s1675_s29 + $0x8] sm:$0xff]  ;;  %v1336_v31 = vmov 0.0|0.0   ;;  %vm1337_vm0 = vmmov 0   ;;  %v452_v36 = vlaneseq }
  0xea   : > { %v1708_v2 = vld [vmem:[%s1683_s8] sm:$0xff]  ;;  %v1711_v3 = vld [vmem:[%s1683_s8 + $0x8] sm:$0xff]  ;;  %v1730_v10 = vld [vmem:[%s1675_s29 + $0x10] sm:$0xff]  ;;  %914 = vmatprep.subr.bf16.mxu0 %v1336_v31  ;;  %920 = vmatprep.subr.bf16.mxu1 %v1336_v31  ;;  %v1338_v35 = vmov 0.0   ;;  %vm463_vm1 = vcmask 130112   ;;  %vm470_vm2 = vcmask 195712  }
  0xeb   : > { %v419_v4 = vadd.f32 %v1708_v2, %v1702_v0  ;;  %v1716_v5 = vld [vmem:[%s1675_s29 + $0x20] sm:$0xff]  ;;  %v1719_v6 = vld [vmem:[%s1675_s29 + $0x28] sm:$0xff]  ;;  %v420_v7 = vadd.f32 %v1711_v3, %v1705_v1  ;;  %v1737_v13 = vld [vmem:[%s1675_s29 + $0x18] sm:$0xff]  ;;  %900 = vmatprep.mubr.msk.f32.mxu0 %vm1337_vm0, %v1338_v35  ;;  %911 = vmatprep.mubr.msk.f32.mxu1 %vm1337_vm0, %v1338_v35  ;;  %v453_v37 = vand.u32 127, %v452_v36  ;;  %v455_v38 = vshrl.u32 %v452_v36, 7  ;;  %s402_s15 = scalar_lea.vmem [#allocation14], %s1671_s10 }
  0xec   : > { %v1724_v8 = vld [vmem:[%s1683_s8 + $0x20] sm:$0xff]  ;;  %v1727_v9 = vld [vmem:[%s1683_s8 + $0x28] sm:$0xff]  ;;  %v1740_v14 = vld [vmem:[%s1683_s8 + $0x10] sm:$0xff]  ;;  %vm477_vm3 = vcmask 261312   ;;  %vm479_vm4 = vcmask 261120   ;;  %s881_s23 = sshll.u32 %s1403_s30, 10 }
  0xed   : > { %v423_v11 = vadd.f32 %v1724_v8, %v1716_v5  ;;  %v424_v12 = vadd.f32 %v1727_v9, %v1719_v6  ;;  %v1743_v15 = vld [vmem:[%s1683_s8 + $0x18] sm:$0xff]  ;;  %v427_v16 = vadd.f32 %v420_v7, %v419_v4  ;;  %v421_v17 = vadd.f32 %v1740_v14, %v1730_v10  ;;  %v1750_v19 = vld [vmem:[%s1675_s29 + $0x30] sm:$0xff]  ;;  %v444_v28 = vld [vmem:[#allocation7] sm:$0xff]  ;;  %s706_s21 = sshll.u32 %s402_s15, 4  ;;  %s1794_s12 = scalar_lea.hbm %s1849_s7, %s881_s23  ;;  %s1796_s21 = int_to_ptr.vmem [resolvable:$true] %s706_s21 }
  0xee   : > { %v422_v18 = vadd.f32 %v1743_v15, %v1737_v13  ;;  %v1753_v20 = vld [vmem:[%s1675_s29 + $0x38] sm:$0xff]  ;;  %v1756_v21 = vld [vmem:[%s1683_s8 + $0x30] sm:$0xff]  ;;  %v445_v29 = vld [vmem:[#allocation7 + $0x8] sm:$0xff]  ;;  %v458_v39 = vadd.s32 4294967288, %v453_v37  ;;  %v465_v41 = vadd.s32 4294967280, %v453_v37  ;;  %v472_v42 = vadd.s32 4294967272, %v453_v37 }
  0xef   : > { %v433_v22 = vadd.f32 %v424_v12, %v423_v11  ;;  %v1759_v23 = vld [vmem:[%s1683_s8 + $0x38] sm:$0xff]  ;;  %v425_v24 = vadd.f32 %v1756_v21, %v1750_v19  ;;  %428 = vadd.xlane.f32.xlu0 %v427_v16  ;;  %v915_v30 = vpack.c.bf16 %v445_v29, %v444_v28  ;;  %v446_v32 = vld [vmem:[#allocation7 + $0x10] sm:$0xff]  ;;  %v456_v44 = vsub.s32 %v453_v37, %v455_v38  ;;  %v557_v61 = vld [vmem:[#allocation11] sm:$0xff]  ;;  %s693_s30 = scalar_lea.sflag [#allocation4], %s1668_s4  ;;  %s1241_s14 = scalar_lea.vmem %s1796_s21, 1024 }
  0xf0   : > { %v430_v25 = vadd.f32 %v422_v18, %v421_v17  ;;  %v426_v26 = vadd.f32 %v1759_v23, %v1753_v20  ;;  %v447_v33 = vld [vmem:[#allocation7 + $0x18] sm:$0xff]  ;;  %v461_v46 = vsub.s32 %v458_v39, %v455_v38  ;;  %v468_v47 = vsub.s32 %v465_v41, %v455_v38  ;;  %v558_v62 = vld [vmem:[#allocation11 + $0x8] sm:$0xff]  ;;  %v552_v12 = vld [vmem:[#allocation8] sm:$0x1]  ;;  %p1242_p7 = scmp.ne.s32.totalorder %s1796_s21, %s1241_s14  ;;  %p1878_p2 = scmp.ne.s32.totalorder %s1866_s9, 0 }
  0xf1   : > { %434 = vadd.xlane.f32.xlu1 %v433_v22  ;;  %916 = vmatpush3.bf16.msra.mxu0 %v915_v30  ;;  %v918_v34 = vpack.c.bf16 %v447_v33, %v446_v32  ;;  %v475_v50 = vsub.s32 %v472_v42, %v455_v38  ;;  %v921_v63 = vpack.c.bf16 %v558_v62, %v557_v61  ;;  %v559_v4 = vld [vmem:[#allocation11 + $0x10] sm:$0xff]  ;;  %v560_v7 = vld [vmem:[#allocation11 + $0x18] sm:$0xff]  ;;  %s1339_s2 = smov [#allocation14]  }
  0xf2   : > { %v436_v27 = vadd.f32 %v426_v26, %v425_v24  ;;  %917 = vmatprep.subr.bf16.mxu0 %v1336_v31  ;;  %v924_v11 = vpack.c.bf16 %v560_v7, %v559_v4  ;;  %v554_v17 = vld [vmem:[#allocation10] sm:$0x1]  ;;  %v561_v26 = vld [vmem:[#allocation13] sm:$0x1]  ;;  %v662_v37 = vsub.f32 %v1730_v10, %v1740_v14  ;;  %v663_v39 = vsub.f32 %v1737_v13, %v1743_v15  ;;  %p1243_p6 = pnand %p1242_p7, %p1878_p2  ;;  %s1245_s17 = sshll.u32 %s1339_s2, 4  ;;  %s1246_s17 = int_to_ptr.vmem [resolvable:$false] %s1245_s17 }
  0xf3   : > { %431 = vadd.xlane.f32.xlu0 %v430_v25  ;;  %922 = vmatpush3.bf16.msra.mxu1 %v921_v63  ;;  %v661_v41 = vsub.f32 %v1705_v1, %v1711_v3  ;;  %s1247_s28 = scalar_lea.vmem %s1246_s17, 2048  ;;  %p1248_p5 = scmp.lt.s32.totalorder %s1796_s21, %s1246_s17 }
  0xf4   : > { %923 = vmatprep.subr.bf16.mxu1 %v1336_v31  ;;  %p1244_p10 = pneg %p1243_p6  ;;  %p1249_p9 = scmp.lt.s32.totalorder %s1247_s28, %s1241_s14 }
  0xf5   : > { %437 = vadd.xlane.f32.xlu1 %v436_v27  ;;  %919 = vmatpush3.bf16.msra.mxu0 %v918_v34  ;;  %v643_v34 = vsub.s32 0, %v455_v38 }
  0xf6   : > { %p1250_p4 = por %p1249_p9, %p1248_p5 }
  0xf7   : > { %925 = vmatpush3.bf16.msra.mxu1 %v924_v11 }
  0xf8   : > { %p1251_p8 = pnand %p1250_p4, %p1244_p10 }
 0x17c   : > { %v429_v40 = vpop.xlane.xlu0 %428 }
 0x17d   : > { %v440_v45 = vmul.f32 0.00390625, %v429_v40  ;;  %v660_v40 = vsub.f32 %v1702_v0, %v1708_v2 }
 0x17e   : > { %v435_v43 = vpop.xlane.xlu1 %434 }
 0x17f   : > { %v442_v48 = vmul.f32 0.00390625, %v435_v43  ;;  %v457_v54 = vrot.slane %v440_v45, %v456_v44  ;;  %v664_v43 = vsub.f32 %v1716_v5, %v1724_v8  ;;  %v665_v44 = vsub.f32 %v1719_v6, %v1727_v9 }
 0x180   : > { %v432_v49 = vpop.xlane.xlu0 %431 }
 0x181   : > { %v441_v51 = vmul.f32 0.00390625, %v432_v49  ;;  %v469_v56 = vrot.slane %v442_v48, %v468_v47 }
 0x182   : > { %v438_v52 = vpop.xlane.xlu1 %437 }
 0x183   : > { %v443_v53 = vmul.f32 0.00390625, %v438_v52  ;;  %v462_v55 = vrot.slane %v441_v51, %v461_v46 }
 0x185   : > { %v476_v57 = vrot.slane %v443_v53, %v475_v50  ;;  %v464_v58 = vsel %vm463_vm1, %v462_v55, %v457_v54  ;;  %v666_v50 = vsub.f32 %v1750_v19, %v1756_v21 }
 0x186   : > { %v471_v59 = vsel %vm470_vm2, %v469_v56, %v464_v58 }
 0x187   : > { %v478_v60 = vsel %vm477_vm3, %v476_v57, %v471_v59 }
 0x188   : > { %901 = vmatmul.mubr.msk.f32.vlgmr.msra.gmra.mrb[0].mxu0 %vm479_vm4, %v478_v60 }
 0x25b   : > { %v548_v16 = vpop.f32.mrb[0].mxu0 }
 0x25c   : > { %v553_v18 = vmul.f32 %v552_v12, %v548_v16  ;;  %v902_v22 = vpop.f32.mrb[1].mxu0 }
 0x25e   : > { %v555_v24 = vadd.f32 %v554_v17, %v553_v18 }
 0x260   : > { %v556_v25 = vmax.f32 %v555_v24, 0.0 }
 0x262   : > { %912 = vmatmul.mubr.msk.f32.vlgmr.msra.gmra.mrb[0].mxu1 %vm479_vm4, %v556_v25 }
 0x335   : > { %v631_v27 = vpop.f32.mrb[0].mxu1 }
 0x336   : > { %v632_v28 = vadd.f32 %v631_v27, %v561_v26  ;;  %v913_v29 = vpop.f32.mrb[1].mxu1 }
 0x338   : > { %v635_v30 = vsub.f32 0.0, %v632_v28 }
 0x33a   : > { %v636_v32 = vmul.f32 1.442695, %v635_v30 }
 0x33c   : > { %1037 = vpow2.f32 %v636_v32 }
 0x346   : > { %v1038_v31 = vpop.eup %1037 }
 0x347   : > { %v638_v33 = vadd.f32 1.0, %v1038_v31 }
 0x349   : > { %1039 = vrcp.f32 %v638_v33 }
 0x353   : > { %v1040_v35 = vpop.eup %1039 }
 0x354   : > { %v644_v36 = vrot.slane %v1040_v35, %v643_v34 }
 0x356   : > { %650 = vbcast.lane.b32.xlu1 %v644_v36, 264  ;;  %646 = vbcast.lane.b32.xlu0 %v644_v36, 256 }
 0x35a   : > { %654 = vbcast.lane.b32.xlu1 %v644_v36, 272 }
 0x35e   : > { %658 = vbcast.lane.b32.xlu1 %v644_v36, 280 }
 0x3c8   : > { %v651_v38 = vpop.permute.xlu1 %650  ;;  %v647_v42 = vpop.permute.xlu0 %646 }
 0x3c9   : > { %v670_v45 = vmul.f32 %v662_v37, %v651_v38  ;;  %v671_v10 = vmul.f32 %v663_v39, %v651_v38  ;;  %v668_v46 = vmul.f32 %v660_v40, %v647_v42  ;;  %v669_v47 = vmul.f32 %v661_v41, %v647_v42 }
 0x3cb   : > { %v678_v13 = vadd.f32 %v670_v45, %v1740_v14  ;;  %v679_v0 = vadd.f32 %v671_v10, %v1743_v15  ;;  %v676_v48 = vadd.f32 %v668_v46, %v1708_v2  ;;  %v677_v1 = vadd.f32 %v669_v47, %v1711_v3 }
 0x3cc   : > { %v655_v49 = vpop.permute.xlu1 %654  ;;  %v667_v14 = vsub.f32 %v1753_v20, %v1759_v23 }
 0x3cd   : > { %686 = vst [vmem:[%s402_s15 + $0x10] sm:$0xff] %v678_v13  ;;  %687 = vst [vmem:[%s402_s15 + $0x18] sm:$0xff] %v679_v0  ;;  %v672_v5 = vmul.f32 %v664_v43, %v655_v49  ;;  %v673_v6 = vmul.f32 %v665_v44, %v655_v49 }
 0x3ce   : > { %684 = vst [vmem:[%s402_s15] sm:$0xff] %v676_v48  ;;  %685 = vst [vmem:[%s402_s15 + $0x8] sm:$0xff] %v677_v1 }
 0x3cf   : > { %v680_v15 = vadd.f32 %v672_v5, %v1724_v8  ;;  %v681_v2 = vadd.f32 %v673_v6, %v1727_v9 }
 0x3d0   : > { %v659_v3 = vpop.permute.xlu1 %658 }
 0x3d1   : > { %688 = vst [vmem:[%s402_s15 + $0x20] sm:$0xff] %v680_v15  ;;  %689 = vst [vmem:[%s402_s15 + $0x28] sm:$0xff] %v681_v2  ;;  %v674_v51 = vmul.f32 %v666_v50, %v659_v3  ;;  %v675_v52 = vmul.f32 %v667_v14, %v659_v3 }
 0x3d3   : > { %v682_v8 = vadd.f32 %v674_v51, %v1756_v21  ;;  %v683_v9 = vadd.f32 %v675_v52, %v1759_v23 }
 0x3d5   : > { %690 = vst [vmem:[%s402_s15 + $0x30] sm:$0xff] %v682_v8  ;;  %691 = vst [vmem:[%s402_s15 + $0x38] sm:$0xff] %v683_v9 }
 0x3d6   : > { %1254 = shalt.err (!%p1251_p8)
}
 0x3d7   : > { %s1255_s18 = scalar_lea.hbm %s1794_s12, 1024  ;;  %s1259_s29 = scalar_lea.hbm %s1849_s7, 2048 }
 0x3d8   : > { %p1256_p11 = scmp.ne.s32.totalorder %s1794_s12, %s1255_s18  ;;  %p1260_p13 = scmp.lt.u32.totalorder %s1794_s12, %s1849_s7 }
 0x3d9   : > { %p1261_p1 = scmp.lt.u32.totalorder %s1259_s29, %s1255_s18  ;;  %p1263_p7 = scmp.lt.u32.totalorder %s1255_s18, %s1794_s12 }
 0x3da   : > { %p1257_p0 = pnand %p1256_p11, %p1878_p2 }
 0x3db   : > { %p1262_p3 = por %p1261_p1, %p1260_p13 }
 0x3dc   : > { %p1258_p12 = pneg %p1257_p0 }
 0x3dd   : > { %p1264_p6 = por %p1263_p7, %p1262_p3 }
 0x3df   : > { %p1265_p10 = pnand %p1264_p6, %p1258_p12 }
 0x3e1   : > { %1268 = shalt.err (!%p1265_p10)
}
 0x3e2   : > { %s1340_s8 = smov 256   ;;  %s1341_s15 = smov 16  }
 0x3e3   : > { %950 = dma.vmem_to_hbm [thread:$0]  (%p1878_p2), %s1796_s21, 1024, %s1794_s12, %s693_s30, %s1340_s8, %s1340_s8, %s1341_s15  }
 0x3e4 PF: > { %s721_s23 = sand.u32 1, %s1311_s24   ;;  %p1879_p5 = scmp.ne.s32.totalorder %s1867_s16, 0 }
 0x3e5   : > { %p1880_p9 = scmp.ge.s32.totalorder %s1323_s27, 2  ;;  %s722_s20 = scalar_lea.sflag [#allocation4], %s721_s23 }
 0x3e7   : > { %p976_p4 = pnand %p1880_p9, %p1879_p5 }
 0x3e9   : > { %1306 = dma.done.wait (!%p976_p4), %s722_s20, 1024  }
 0x3ea   : > { %1308 = vsyncadd (!%p976_p4), %s722_s20, 4294966272  ;;  %p25_p8 = scmp.ge.s32.totalorder %s1547_s11, 4   ;;  %s1881_s24 = smov %s1315_s25 }
 0x3eb   : > { %s1882_s25 = smov %s1319_s26  ;;  %s1883_s26 = smov %s1559_s22 }
 0x3ec   : > { %s1884_s27 = smov %s1547_s11  ;;  %27 = sbr.rel (!%p25_p8) target bundleno = 14 (0xe), region = 126 }
 0x3f3   :  { %727 = vsyncpa [#allocation3], 1 }
 0x3f4   :  { %729 = vsyncpa [#allocation3 + $0x1], 1 }
 0x3f5   :  { %730 = vsyncpa [#allocation6], 1 }
 0x3f6   :  { %732 = vsyncpa [#allocation6 + $0x1], 1 }
 0x3f7   :  { %733 = vsyncpa [#allocation9], 1 }
 0x3f8   :  { %734 = vsyncpa [#allocation12], 1 }
 0x3f9   :  { %735 = vsyncpa [#allocation4], 1 }
 0x3fa   :  { %737 = vsyncpa [#allocation4 + $0x1], 1 }

</bundles_post_ra>
